<compile_context>
chip_gen: v6e
topology: v6e:2x2x1
jax: 0.10.0
libtpu: 0.0.40
codegen_flags: <defaults>
</compile_context>

<pallas_src>
import functools

import jax
import jax.numpy as jnp
from jax.experimental import pallas as pl
from jax.experimental.pallas import tpu as pltpu


def _focus_conv_kernel(x_ref, w_ref, b_ref, o_ref):
    """One spatial tile: (C2, Cin) @ (Cin, tile) -> +BN bias -> SiLU.

    x_ref: (1, Cin, tile) bf16   w_ref: (C2, Cin) bf16 (BN scale folded in)
    b_ref: (C2, 1) f32           o_ref: (1, C2, tile) out dtype (bf16 default)
    """
    y = jnp.dot(w_ref[...], x_ref[0], preferred_element_type=jnp.float32)
    y = y + b_ref[...]                                  # folded BN bias
    # SiLU = y * sigmoid(y).  exp -> EUP, approximate reciprocal -> EUP slot
    # (no VPU divide).  Clamp the exponent so large-negative y (incl. garbage
    # in padded lanes of the last partial tile) stays finite: exp<=e^60,
    # recip -> ~0, silu -> ~0.
    e = jnp.exp(jnp.minimum(-y, 60.0))
    silu = y * pl.reciprocal(1.0 + e, approx=True)
    o_ref[0] = silu.astype(o_ref.dtype)


@functools.partial(jax.jit, static_argnames=("tn", "out_dtype"))
def focus_forward(x, weight, gamma, beta, run_mean, run_var, *,
                  eps=1e-5, tn=8192, out_dtype=jnp.bfloat16):
    """x: (B, C1, H, W) f32 NCHW.  weight: (C2, 4*C1, 1, 1).  Returns NCHW.

    out_dtype defaults to bf16 (downstream conv casts to bf16 anyway); pass
    out_dtype=jnp.float32 to keep full-precision outputs.
    """
    B, C1, H, W = x.shape
    C2 = weight.shape[0]
    H2, W2 = H // 2, W // 2
    Cin = 4 * C1
    S = H2 * W2

    # --- space-to-depth (+ bf16 cast): one fused XLA transpose -------------
    # Axes after reshape: (b, c, i, h_off, j, w_off).  Transposing to
    # (b, w_off, h_off, c, i, j) and flattening gives channel index
    # (2*w_off + h_off)*C1 + c == torch concat order [(0,0),(1,0),(0,1),(1,1)]
    # of (h_off, w_off) phases.
    x_sd = jnp.transpose(
        x.astype(jnp.bfloat16).reshape(B, C1, H2, 2, W2, 2),
        (0, 5, 3, 1, 2, 4),
    ).reshape(B, Cin, S)

    # --- fold conv weight + BN scale into one matrix; bias kept separate ---
    scale = gamma / jnp.sqrt(run_var + eps)                         # (C2,)
    w_mat = (weight.reshape(C2, Cin) * scale[:, None]).astype(jnp.bfloat16)
    bias = (beta - run_mean * scale).reshape(C2, 1).astype(jnp.float32)

    # --- spatial (lane) tile selection + VMEM budget ------------------------
    out_bytes = jnp.dtype(out_dtype).itemsize
    if S < 128:
        tile = S                       # tiny spatial extent: one full block
    else:
        tile = min(tn, S)
        if B == 1:
            # Keep >= 2 spatial tiles per batch: both v7x TensorCores get
            # work and the input/output DMA pipeline has a step to overlap.
            tile = min(tile, -(-S // 2))
        tile = max(128, (tile // 128) * 128)   # multiple of 128 lanes

    def _vmem_est(t):
        return (2 * Cin * t * 2            # act blocks, bf16, double-buffered
                + 2 * C2 * t * out_bytes   # out blocks, double-buffered
                + 3 * C2 * t * 4           # f32 epilogue temps (acc/exp/silu)
                + 2 * C2 * Cin * 2 + 2 * C2 * 4
                + (2 << 20))               # slack for Mosaic internals

    # Shrink the tile until it fits a conservative budget (v7x: 64 MiB phys).
    while tile > 256 and _vmem_est(tile) > (48 << 20):
        tile = max(128, (tile // 2 // 128) * 128)

    grid = (B, pl.cdiv(S, tile))
    vmem_limit = int(min(max(_vmem_est(tile), 32 << 20), 56 << 20))

    out = pl.pallas_call(
        _focus_conv_kernel,
        out_shape=jax.ShapeDtypeStruct((B, C2, S), out_dtype),
        grid_spec=pltpu.PrefetchScalarGridSpec(
            num_scalar_prefetch=0,
            grid=grid,
            in_specs=[
                pl.BlockSpec((1, Cin, tile), lambda b, j: (b, 0, j)),  # acts
                # Constant index_map -> block stays resident, no per-step DMA.
                pl.BlockSpec((C2, Cin), lambda b, j: (0, 0)),          # weight
                pl.BlockSpec((C2, 1), lambda b, j: (0, 0)),            # BN bias
            ],
            out_specs=pl.BlockSpec((1, C2, tile), lambda b, j: (b, 0, j)),
        ),
        compiler_params=pltpu.CompilerParams(
            dimension_semantics=("parallel", "parallel"),
            vmem_limit_bytes=vmem_limit,
        ),
    )(x_sd, w_mat, bias)

    # (B, C2, H2*W2) -> (B, C2, H2, W2): contiguous reshape, no data movement.
    return out.reshape(B, C2, H2, W2)


if __name__ == "__main__":
    key = jax.random.PRNGKey(0)
    B, C1, H, W = 2, 4, 16, 16
    C2 = 8

    k_x, k_w, k_g, k_b, k_m, k_v = jax.random.split(key, 6)
    x = jax.random.normal(k_x, (B, C1, H, W), dtype=jnp.float32)
    # Conv2d(4*C1, C2, k=1, bias=False) weight: (C2, 4*C1, 1, 1)
    weight = jax.random.normal(k_w, (C2, 4 * C1, 1, 1), dtype=jnp.float32) * 0.1
    # Deterministic BatchNorm2d parameters / running stats (inference mode).
    gamma = 1.0 + 0.1 * jax.random.normal(k_g, (C2,), dtype=jnp.float32)
    beta = 0.1 * jax.random.normal(k_b, (C2,), dtype=jnp.float32)
    run_mean = 0.05 * jax.random.normal(k_m, (C2,), dtype=jnp.float32)
    run_var = 1.0 + 0.1 * jnp.abs(jax.random.normal(k_v, (C2,), dtype=jnp.float32))

    out = focus_forward(x, weight, gamma, beta, run_mean, run_var)
    jax.block_until_ready(out)

    # Reference (pure f32, torch Focus semantics).
    x_sd_ref = jnp.concatenate(
        [x[..., ::2, ::2], x[..., 1::2, ::2], x[..., ::2, 1::2], x[..., 1::2, 1::2]],
        axis=1,
    )
    y_ref = jnp.einsum("bchw,oc->bohw", x_sd_ref, weight.reshape(C2, 4 * C1))
    s = gamma / jnp.sqrt(run_var + 1e-5)
    y_ref = y_ref * s[None, :, None, None] + (beta - run_mean * s)[None, :, None, None]
    y_ref = y_ref * jax.nn.sigmoid(y_ref)

    assert out.shape == (B, C2, H // 2, W // 2)
    assert out.dtype == jnp.bfloat16
    err = float(jnp.max(jnp.abs(out.astype(jnp.float32) - y_ref)))
    # bf16 activations/weights/output + approximate EUP reciprocal.
    assert err < 5e-2, f"max abs error {err}"

    print("KERNEL_OK")
</pallas_src>

<mosaic_0001>
module attributes {stable_mosaic.version = 11 : i64} {
  func.func @_focus_conv_kernel(%arg0: i32, %arg1: i32, %arg2: memref<1x16x64xbf16, #tpu.memory_space<vmem>>, %arg3: memref<8x16xbf16, #tpu.memory_space<vmem>>, %arg4: memref<8x1xf32, #tpu.memory_space<vmem>>, %arg5: memref<1x8x64xbf16, #tpu.memory_space<vmem>>) attributes {dimension_semantics = [#tpu.dimension_semantics<parallel>, #tpu.dimension_semantics<parallel>], iteration_bounds = array<i64: 2, 1>, scalar_prefetch = 0 : i64, scratch_operands = 0 : i64, tpu.core_type = #tpu.core_type<tc>, window_params = [{transform_indices = @transform_0, window_bounds = array<i64: 1, 16, 64>}, {pipeline_mode = #tpu.pipeline_mode<synchronous>, transform_indices = @transform_1, window_bounds = array<i64: 8, 16>}, {pipeline_mode = #tpu.pipeline_mode<synchronous>, transform_indices = @transform_2, window_bounds = array<i64: 8, 1>}, {transform_indices = @transform_3, window_bounds = array<i64: 1, 8, 64>}]} {
    %c0 = arith.constant 0 : index
    %c0_0 = arith.constant 0 : index
    %0 = vector.load %arg3[%c0, %c0_0] : memref<8x16xbf16, #tpu.memory_space<vmem>>, vector<8x16xbf16>
    %c0_1 = arith.constant 0 : index
    %c0_2 = arith.constant 0 : index
    %c0_3 = arith.constant 0 : index
    %1 = vector.load %arg2[%c0_1, %c0_2, %c0_3] : memref<1x16x64xbf16, #tpu.memory_space<vmem>>, vector<1x16x64xbf16>
    %2 = vector.shape_cast %1 : vector<1x16x64xbf16> to vector<16x64xbf16>
    %cst = arith.constant dense<0.000000e+00> : vector<8x64xf32>
    %3 = tpu.matmul %0, %2, %cst {dimension_numbers = #tpu.dot_dimension_numbers<[1], [0], [0], [1], [0, 0, 1, 1], [], []>} : vector<8x16xbf16>, vector<16x64xbf16>, vector<8x64xf32> -> vector<8x64xf32>
    %c0_4 = arith.constant 0 : index
    %c0_5 = arith.constant 0 : index
    %4 = vector.load %arg4[%c0_4, %c0_5] : memref<8x1xf32, #tpu.memory_space<vmem>>, vector<8x1xf32>
    %5 = vector.broadcast %4 : vector<8x1xf32> to vector<8x64xf32>
    %6 = arith.addf %3, %5 : vector<8x64xf32>
    %cst_6 = arith.constant 0.000000e+00 : f32
    %7 = vector.broadcast %cst_6 : f32 to vector<8x64xf32>
    %8 = arith.subf %7, %6 : vector<8x64xf32>
    %cst_7 = arith.constant 6.000000e+01 : f32
    %9 = vector.broadcast %cst_7 : f32 to vector<8x64xf32>
    %10 = arith.minimumf %8, %9 : vector<8x64xf32>
    %11 = math.exp %10 : vector<8x64xf32>
    %cst_8 = arith.constant 1.000000e+00 : f32
    %12 = vector.broadcast %cst_8 : f32 to vector<8x64xf32>
    %13 = arith.addf %12, %11 : vector<8x64xf32>
    %14 = tpu.reciprocal %13 {approx = true} : vector<8x64xf32> -> vector<8x64xf32>
    %15 = arith.mulf %6, %14 : vector<8x64xf32>
    %16 = arith.truncf %15 : vector<8x64xf32> to vector<8x64xbf16>
    %c0_9 = arith.constant 0 : index
    %c0_10 = arith.constant 0 : index
    %c0_11 = arith.constant 0 : index
    %17 = vector.load %arg5[%c0_9, %c0_10, %c0_11] : memref<1x8x64xbf16, #tpu.memory_space<vmem>>, vector<1x8x64xbf16>
    %18 = vector.shape_cast %17 : vector<1x8x64xbf16> to vector<8x64xbf16>
    %19 = vector.shape_cast %16 : vector<8x64xbf16> to vector<1x8x64xbf16>
    tpu.vector_store %arg5[%c0_9, %c0_10, %c0_11], %19 {strides = array<i32>} : memref<1x8x64xbf16, #tpu.memory_space<vmem>>, vector<1x8x64xbf16>,
    return
  }
  func.func @transform_0(%arg0: i32, %arg1: i32) -> (i32, i32, i32) {
    %c0_i32 = arith.constant 0 : i32
    %c0_i32_0 = arith.constant 0 : i32
    return %arg0, %c0_i32, %arg1 : i32, i32, i32
  }
  func.func @transform_1(%arg0: i32, %arg1: i32) -> (i32, i32) {
    %c0_i32 = arith.constant 0 : i32
    %c0_i32_0 = arith.constant 0 : i32
    %c0_i32_1 = arith.constant 0 : i32
    return %c0_i32, %c0_i32_0 : i32, i32
  }
  func.func @transform_2(%arg0: i32, %arg1: i32) -> (i32, i32) {
    %c0_i32 = arith.constant 0 : i32
    %c0_i32_0 = arith.constant 0 : i32
    %c0_i32_1 = arith.constant 0 : i32
    return %c0_i32, %c0_i32_0 : i32, i32
  }
  func.func @transform_3(%arg0: i32, %arg1: i32) -> (i32, i32, i32) {
    %c0_i32 = arith.constant 0 : i32
    %c0_i32_0 = arith.constant 0 : i32
    return %arg0, %c0_i32, %arg1 : i32, i32, i32
  }
}

</mosaic_0001>

<bundles_post_ra>
// kernel: focus_forward.1
= control target key start
LH: loop header
LB: loop body
LE: loop exit
PB: predicated region body
PF: predicated region fallthrough
CT: control target
= control target key end

     0   :  { %s448_s12 = smov 0   ;;  %s450_s13 = smov 0   ;;  %s487_s0 = inlined_call_operand.vmem [shape: bf16[2,16,64], index: 0, kind: input, shape index: {}]   ;;  %s488_s1 = inlined_call_operand.vmem [shape: bf16[8,16], index: 1, kind: input, shape index: {}]   ;;  %s489_s2 = inlined_call_operand.vmem [shape: f32[8,1], index: 2, kind: input, shape index: {}]   ;;  %s490_s3 = inlined_call_operand.vmem [shape: bf16[2,8,64], index: 3, kind: output, shape index: {}]  }
   0x1   :  { %s452_s14 = smov 0  }
   0x2 LB: > { %s25_s15 = sadd.s32 1, %s419_s13  ;;  %p351_p0 = scmp.ge.s32.totalorder %s423_s14, 1  ;;  %s423_s14 = sphi %s452_s14, %s13_s14   ;;  %s419_s13 = sphi %s450_s13, %s492_s13   ;;  %s415_s12 = sphi %s448_s12, %s491_s12  }
   0x3   : > { %p27_p1 = scmp.ge.s32.totalorder %s25_s15, 2  ;;  %p156_p2 = scmp.lt.s32.totalorder %s423_s14, 3 }
   0x5   : > { %s494_s15 = smov (%p27_p1, %s25_s15), 0  ;;  %p157_p3 = pnand %p351_p0, %p156_p2 }
   0x6   : > { %p185_p4 = scmp.lt.s32.totalorder (!%p157_p3), %s415_s12, 1 }
   0x7   : > { %160 = sbr.rel (%p157_p3) target bundleno = 255 (0xff), region = 32 }
   0xc   : > { %v425_v0 = vmov 0.0   ;;  %vm426_vm0 = vmmov 0   ;;  %v204_v1 = vld [vmem:[%s489_s2] sm:$0xff]  ;;  %s496_s12 = smov (!%p185_p4, %s415_s12), 1  ;;  %v427_v2 = vmov 0   ;;  %vm216_vm1 = vcmask 130048  }
   0xd   : > { %362 = vmatprep.subr.bf16.mxu0 %v425_v0  ;;  %364 = vmatprep.mubr.msk.bf16.mxu0 %vm426_vm0, %v425_v0  ;;  %s359_s18 = sshll.u32 %s496_s12, 3  ;;  %v201_v4 = vld [vmem:[%s488_s1] sm:$0xf]  ;;  %s354_s24 = sshll.u32 %s496_s12, 2  ;;  %vm268_vm2 = vcmask 519168  }
   0xe   : > { %395 = vset.pattern.permute.xlu0 %v427_v2  ;;  %s192_s21 = scalar_lea.vmem %s487_s0, %s359_s18  ;;  %s199_s27 = scalar_lea.vmem %s490_s3, %s354_s24 }
   0xf   : > { %207 = vperm.xlu0 %395, %v204_v1   ;;  %v396_v3 = vld [vmem:[%s192_s21] sm:$0xff]  }
  0x10   : > { %363 = vmatpush3.bf16.msra.mxu0 %v396_v3 }
  0x13   : > { %365 = vmatmul.mubr.msk.bf16.vlgmr.msra.gmra.mxu0 %vm216_vm1, %v201_v4 }
  0x8a   : > { %v208_v5 = vpop.permute.xlu0 %207 }
  0xd3   : > { %v254_v6 = vpop.f32.mrf.mxu0 }
  0xd4   : > { %v255_v7 = vadd.f32 %v254_v6, %v208_v5 }
  0xd5   : > { %v366_v8 = vpop.f32.mrf.mxu0 }
  0xd6   : > { %v260_v9 = vsub.f32 0.0, %v255_v7 }
  0xd7   : > { %v257_v10 = vpop.f32.mrf.mxu0 }
  0xd8   : > { %v261_v11 = vmin.f32 %v260_v9, 60.0 }
  0xd9   : > { %v367_v12 = vpop.f32.mrf.mxu0 }
  0xda   : > { %v262_v13 = vmul.f32 1.442695, %v261_v11 }
  0xdc   : > { %397 = vpow2.f32 %v262_v13 }
  0xe9   : > { %v398_v14 = vpop.eup %397 }
  0xea   : > { %v264_v15 = vadd.f32 1.0, %v398_v14 }
  0xec   : > { %399 = vrcp.f32 %v264_v15 }
  0xf9   : > { %v400_v16 = vpop.eup %399 }
  0xfa   : > { %v266_v17 = vmul.f32 %v400_v16, %v255_v7 }
  0xfc   : > { %v267_v18 = vpack.c.bf16 %v266_v17, %v266_v17 }
  0xfe   : > { %269 = vst.msk [vmem:[%s199_s27] sm:$0xf] %vm268_vm2, %v267_v18 }
  0xff PF: > { %s13_s14 = sadd.s32 1, %s423_s14   ;;  %s491_s12 = smov %s419_s13 }
 0x100   : > { %p10_p5 = scmp.ge.s32.totalorder %s13_s14, 4   ;;  %s492_s13 = smov %s494_s15 }
 0x102   :  { %12 = sbr.rel (!%p10_p5) target bundleno = 2 (0x2), region = 62 }

</bundles_post_ra>
